<compile_context>
chip_gen: v7x
topology: tpu7x:2x2x1
jax: 0.10.0
libtpu: 0.0.40
codegen_flags: <defaults>
</compile_context>

<pallas_src>
import jax
import jax.numpy as jnp
from jax.experimental import pallas as pl
from jax.experimental.pallas import tpu as pltpu


def _round_up(a, b):
    return (a + b - 1) // b * b


def part_dict_kernel(x_ref, emb_ref, bias_ref, w_ref, codes_ref, bow_ref, acc_ref):
    """One grid step = one batch element b, one spatial tile l.

    x_ref:     (1, C, TL)  bf16 cropped features tile (channels x spatial)
    emb_ref:   (K, C)      bf16 dictionary with 2*inv_delta_adaptive folded in (resident)
    bias_ref:  (K, 1)      f32  -inv_delta_adaptive * ||e_k||^2 (resident)
    w_ref:     (1, TL)     f32  per-column bow weight: 1/L on valid cols, 0 on padding
    codes_ref: (1, K, TL)  bf16 softmax codes tile (lane-dense along spatial)
    bow_ref:   (1, K, 1)   f32  per-batch bow output (written at finalize)
    acc_ref:   (K, TL)     f32  VMEM scratch: elementwise running bow sum
    """
    l = pl.program_id(1)
    n_l = pl.num_programs(1)

    # logits[k, t] = (2*ida) * (E @ x)[k, t] - ida * ||e_k||^2
    # (per-location ||x||^2 dropped: softmax over k is invariant to it)
    xe = jnp.dot(emb_ref[...], x_ref[0],
                 preferred_element_type=jnp.float32)          # bf16 MXU -> (K, TL) f32
    logits = xe + bias_ref[...]                               # scale pre-folded: one add

    # softmax over the word axis K (sublanes), all in f32
    m = jnp.max(logits, axis=0, keepdims=True)                # (1, TL)
    p = jnp.exp(logits - m)                                   # EUP
    denom = jnp.sum(p, axis=0, keepdims=True)                 # (1, TL)
    codes = p * pl.reciprocal(denom, approx=False)            # exact: codes sum to 1
    codes_ref[0] = codes.astype(codes_ref.dtype)              # bf16 store

    @pl.when(l == 0)
    def _init():
        acc_ref[...] = jnp.zeros_like(acc_ref)

    # bow accumulation: elementwise weighted running sum (VALU only per tile);
    # the cross-lane reduce happens once per batch in the finalize step.
    acc_ref[...] += codes * w_ref[...]

    @pl.when(l == n_l - 1)
    def _finalize():
        bow = jnp.sum(acc_ref[...], axis=1, keepdims=True)    # (K, 1) spatial mean
        l1 = jnp.maximum(jnp.sum(jnp.abs(bow), axis=0, keepdims=True), 1e-12)
        bow_ref[...] = (bow / l1)[None]                       # L1 normalize


def part_dict_forward(features, embedding, inv_delta=15.0, min_distance_mean=0.5,
                      tile_l=1024):
    """features: [B, C, H, W] (NCHW, like PyTorch). embedding: [K, C]."""
    B, C, H, W = features.shape
    K = embedding.shape[0]
    Hc, Wc = H - 2, W - 2
    L = Hc * Wc

    # trace-time constants (eval-mode min_distance_mean buffer is a constant)
    ida = float(inv_delta) / float(min_distance_mean)
    scale = 2.0 * ida

    # dictionary: fold the softmax scale in (kernel epilogue is a single add),
    # cast to bf16 for the MXU; bias stays f32.
    e32 = embedding.astype(jnp.float32)
    e_scaled = (scale * e32).astype(jnp.bfloat16)                      # (K, C)
    bias = (-ida) * jnp.sum(e32 * e32, axis=1, keepdims=True)          # (K, 1) f32

    # one fused pre-pass: crop + bf16 cast + reshape (NCHW keeps spatial minor,
    # so no transpose) -> lane-dense [B, C, L] bf16.
    x = features[:, :, 1:-1, 1:-1].astype(jnp.bfloat16).reshape(B, C, L)

    # spatial tile: as large as possible (amortizes per-grid-step overhead) while
    # keeping the (K, TL) f32 scratch + f32 intermediates small in VMEM.
    tl_cap = max(128, min(int(tile_l), (4 * 1024 * 1024 // (4 * K)) // 128 * 128))
    if L <= tl_cap:
        TL, L_pad = L, L                       # single tile, no padding pass
    else:
        TL = max(128, (tl_cap // 128) * 128)
        L_pad = _round_up(L, TL)
        if L_pad != L:
            x = jnp.pad(x, ((0, 0), (0, 0), (0, L_pad - L)))
    n_l = L_pad // TL

    # per-column bow weight: 1/L on valid columns, 0 on padding -> the scratch
    # accumulator sums directly to the spatial mean (no in-kernel mask/iota).
    w = jnp.full((1, L), 1.0 / L, dtype=jnp.float32)
    if L_pad != L:
        w = jnp.pad(w, ((0, 0), (0, L_pad - L)))

    codes_pad, bow3 = pl.pallas_call(
        part_dict_kernel,
        grid=(B, n_l),
        in_specs=[
            pl.BlockSpec((1, C, TL), lambda b, l: (b, 0, l)),   # x tile (bf16)
            pl.BlockSpec((K, C), lambda b, l: (0, 0)),          # scaled dict (resident)
            pl.BlockSpec((K, 1), lambda b, l: (0, 0)),          # bias (resident)
            pl.BlockSpec((1, TL), lambda b, l: (0, l)),         # bow column weights
        ],
        out_specs=(
            pl.BlockSpec((1, K, TL), lambda b, l: (b, 0, l)),   # codes tile (bf16)
            pl.BlockSpec((1, K, 1), lambda b, l: (b, 0, 0)),    # bow (resident per b)
        ),
        out_shape=(
            jax.ShapeDtypeStruct((B, K, L_pad), jnp.bfloat16),
            jax.ShapeDtypeStruct((B, K, 1), jnp.float32),
        ),
        scratch_shapes=[pltpu.VMEM((K, TL), jnp.float32)],
        compiler_params=pltpu.CompilerParams(
            dimension_semantics=("parallel", "arbitrary"),
            vmem_limit_bytes=32 * 1024 * 1024,
        ),
    )(x, e_scaled, bias, w)

    # codes already in [B, K, L] layout -> free reshape to PyTorch convention
    codes = codes_pad[:, :, :L].reshape(B, K, Hc, Wc)
    bow = bow3[:, :, 0]
    return bow, codes


def _reference_bf16_inputs(features, embedding, inv_delta=15.0, min_distance_mean=0.5):
    """Models the kernel math exactly: bf16-rounded MXU inputs, f32 softmax/bow."""
    B, C, H, W = features.shape
    K = embedding.shape[0]
    Hc, Wc = H - 2, W - 2
    ida = inv_delta / min_distance_mean
    scale = 2.0 * ida
    x = features[:, :, 1:-1, 1:-1].reshape(B, C, Hc * Wc)
    x = x.astype(jnp.bfloat16).astype(jnp.float32)
    e = embedding.astype(jnp.float32)
    e_s = (scale * e).astype(jnp.bfloat16).astype(jnp.float32)
    bias = -ida * jnp.sum(e * e, axis=1)                           # (K,)
    logits = jnp.einsum('kc,bcl->bkl', e_s, x,
                        precision=jax.lax.Precision.HIGHEST) + bias[None, :, None]
    codes = jax.nn.softmax(logits, axis=1)                         # (B, K, L)
    bow = jnp.mean(codes, axis=2)
    bow = bow / jnp.maximum(jnp.sum(jnp.abs(bow), axis=1, keepdims=True), 1e-12)
    return bow, codes.reshape(B, K, Hc, Wc)


def _reference_f32(features, embedding, inv_delta=15.0, min_distance_mean=0.5):
    """Plain-JAX f32 reference mirroring the PyTorch forward (eval mode)."""
    f = features[:, :, 1:-1, 1:-1].astype(jnp.float32)             # [B, C, Hc, Wc]
    e = embedding.astype(jnp.float32)                              # [K, C]
    f_sq = jnp.sum(f * f, axis=1, keepdims=True)
    conv = jnp.einsum('bchw,kc->bkhw', f, -2.0 * e,
                      precision=jax.lax.Precision.HIGHEST)
    dist = f_sq + conv + jnp.sum(e * e, axis=1)[None, :, None, None]
    ida = inv_delta / min_distance_mean
    codes = jax.nn.softmax(-ida * dist, axis=1)
    bow = jnp.mean(codes, axis=(2, 3))
    bow = bow / jnp.maximum(jnp.sum(jnp.abs(bow), axis=1, keepdims=True), 1e-12)
    return bow, codes


if __name__ == "__main__":
    B, C, H, W = 2, 32, 10, 10     # features
    K = 16                          # num_words
    inv_delta = 15.0

    key = jax.random.PRNGKey(0)
    k_feat, k_emb = jax.random.split(key)
    features = jax.random.normal(k_feat, (B, C, H, W), dtype=jnp.float32)
    # embedding = torch.randn(K, C).clamp(min=0)  (deterministic synthetic init)
    embedding = jnp.maximum(jax.random.normal(k_emb, (K, C), dtype=jnp.float32), 0.0)

    bow, codes = part_dict_forward(features, embedding, inv_delta=inv_delta)
    jax.block_until_ready((bow, codes))

    assert bow.shape == (B, K)
    assert codes.shape == (B, K, H - 2, W - 2)

    # Tight check against a reference that models the kernel math exactly
    # (same bf16-rounded MXU inputs, f32 softmax).  Differences are only the
    # bf16 codes store and f32 accumulation order.
    bow_q, codes_q = _reference_bf16_inputs(features, embedding, inv_delta=inv_delta)
    assert jnp.allclose(codes.astype(jnp.float32), codes_q, atol=2e-2, rtol=2e-2)
    assert jnp.allclose(bow, bow_q, atol=1e-2, rtol=1e-2)

    # Loose semantic check against the full-f32 PyTorch-style reference.  The
    # sharp softmax (inv_delta_adaptive = 30) means bf16 MXU inputs can shift
    # codes noticeably at near-tied dictionary words, but the spatially-averaged
    # bow stays close.
    bow_f32, _ = _reference_f32(features, embedding, inv_delta=inv_delta)
    assert jnp.allclose(bow, bow_f32, atol=1e-1)

    print("KERNEL_OK")
</pallas_src>

<mosaic_0001>
module attributes {stable_mosaic.version = 11 : i64} {
  func.func @part_dict_kernel(%arg0: i32, %arg1: i32, %arg2: memref<1x32x64xbf16, #tpu.memory_space<vmem>>, %arg3: memref<16x32xbf16, #tpu.memory_space<vmem>>, %arg4: memref<16x1xf32, #tpu.memory_space<vmem>>, %arg5: memref<1x64xf32, #tpu.memory_space<vmem>>, %arg6: memref<1x16x64xbf16, #tpu.memory_space<vmem>>, %arg7: memref<1x16x1xf32, #tpu.memory_space<vmem>>, %arg8: memref<16x64xf32, #tpu.memory_space<vmem>>) attributes {dimension_semantics = [#tpu.dimension_semantics<parallel>, #tpu.dimension_semantics<arbitrary>], iteration_bounds = array<i64: 2, 1>, scalar_prefetch = 0 : i64, scratch_operands = 1 : i64, tpu.core_type = #tpu.core_type<tc>, window_params = [{transform_indices = @transform_0, window_bounds = array<i64: 1, 32, 64>}, {pipeline_mode = #tpu.pipeline_mode<synchronous>, transform_indices = @transform_1, window_bounds = array<i64: 16, 32>}, {pipeline_mode = #tpu.pipeline_mode<synchronous>, transform_indices = @transform_2, window_bounds = array<i64: 16, 1>}, {transform_indices = @transform_3, window_bounds = array<i64: 1, 64>}, {transform_indices = @transform_4, window_bounds = array<i64: 1, 16, 64>}, {transform_indices = @transform_5, window_bounds = array<i64: 1, 16, 1>}]} {
    %c0 = arith.constant 0 : index
    %c0_0 = arith.constant 0 : index
    %0 = vector.load %arg3[%c0, %c0_0] : memref<16x32xbf16, #tpu.memory_space<vmem>>, vector<16x32xbf16>
    %c0_1 = arith.constant 0 : index
    %c0_2 = arith.constant 0 : index
    %c0_3 = arith.constant 0 : index
    %1 = vector.load %arg2[%c0_1, %c0_2, %c0_3] : memref<1x32x64xbf16, #tpu.memory_space<vmem>>, vector<1x32x64xbf16>
    %2 = vector.shape_cast %1 : vector<1x32x64xbf16> to vector<32x64xbf16>
    %cst = arith.constant dense<0.000000e+00> : vector<16x64xf32>
    %3 = tpu.matmul %0, %2, %cst {dimension_numbers = #tpu.dot_dimension_numbers<[1], [0], [0], [1], [0, 0, 1, 1], [], []>} : vector<16x32xbf16>, vector<32x64xbf16>, vector<16x64xf32> -> vector<16x64xf32>
    %c0_4 = arith.constant 0 : index
    %c0_5 = arith.constant 0 : index
    %4 = vector.load %arg4[%c0_4, %c0_5] : memref<16x1xf32, #tpu.memory_space<vmem>>, vector<16x1xf32>
    %5 = vector.broadcast %4 : vector<16x1xf32> to vector<16x64xf32>
    %6 = arith.addf %3, %5 : vector<16x64xf32>
    %cst_6 = arith.constant dense<0xFF800000> : vector<64xf32>
    %7 = vector.multi_reduction <maximumf>, %6, %cst_6 [0] : vector<16x64xf32> to vector<64xf32>
    %8 = vector.shape_cast %7 : vector<64xf32> to vector<1x64xf32>
    %9 = vector.broadcast %8 : vector<1x64xf32> to vector<16x64xf32>
    %10 = arith.subf %6, %9 : vector<16x64xf32>
    %11 = math.exp %10 : vector<16x64xf32>
    %cst_7 = arith.constant dense<0.000000e+00> : vector<64xf32>
    %12 = vector.multi_reduction <add>, %11, %cst_7 [0] : vector<16x64xf32> to vector<64xf32>
    %13 = vector.shape_cast %12 : vector<64xf32> to vector<1x64xf32>
    %14 = tpu.reciprocal %13 : vector<1x64xf32> -> vector<1x64xf32>
    %15 = vector.broadcast %14 : vector<1x64xf32> to vector<16x64xf32>
    %16 = arith.mulf %11, %15 : vector<16x64xf32>
    %17 = arith.truncf %16 : vector<16x64xf32> to vector<16x64xbf16>
    %c0_8 = arith.constant 0 : index
    %c0_9 = arith.constant 0 : index
    %c0_10 = arith.constant 0 : index
    %18 = vector.load %arg6[%c0_8, %c0_9, %c0_10] : memref<1x16x64xbf16, #tpu.memory_space<vmem>>, vector<1x16x64xbf16>
    %19 = vector.shape_cast %18 : vector<1x16x64xbf16> to vector<16x64xbf16>
    %20 = vector.shape_cast %17 : vector<16x64xbf16> to vector<1x16x64xbf16>
    tpu.vector_store %arg6[%c0_8, %c0_9, %c0_10], %20 {strides = array<i32>} : memref<1x16x64xbf16, #tpu.memory_space<vmem>>, vector<1x16x64xbf16>,
    %c0_i32 = arith.constant 0 : i32
    %21 = arith.cmpi eq, %arg1, %c0_i32 : i32
    %22 = arith.extui %21 : i1 to i32
    %c0_i32_11 = arith.constant 0 : i32
    %23 = arith.cmpi ne, %22, %c0_i32_11 : i32
    scf.if %23 {
      %cst_20 = arith.constant 0.000000e+00 : f32
      %33 = vector.broadcast %cst_20 : f32 to vector<16x64xf32>
      %c0_21 = arith.constant 0 : index
      %c0_22 = arith.constant 0 : index
      %34 = vector.load %arg8[%c0_21, %c0_22] : memref<16x64xf32, #tpu.memory_space<vmem>>, vector<16x64xf32>
      tpu.vector_store %arg8[%c0_21, %c0_22], %33 {strides = array<i32>} : memref<16x64xf32, #tpu.memory_space<vmem>>, vector<16x64xf32>,
    } else {
    }
    %c0_12 = arith.constant 0 : index
    %c0_13 = arith.constant 0 : index
    %24 = vector.load %arg8[%c0_12, %c0_13] : memref<16x64xf32, #tpu.memory_space<vmem>>, vector<16x64xf32>
    %c0_14 = arith.constant 0 : index
    %c0_15 = arith.constant 0 : index
    %25 = vector.load %arg5[%c0_14, %c0_15] : memref<1x64xf32, #tpu.memory_space<vmem>>, vector<1x64xf32>
    %26 = vector.broadcast %25 : vector<1x64xf32> to vector<16x64xf32>
    %27 = arith.mulf %16, %26 : vector<16x64xf32>
    %28 = arith.addf %24, %27 : vector<16x64xf32>
    %c0_16 = arith.constant 0 : index
    %c0_17 = arith.constant 0 : index
    %29 = vector.load %arg8[%c0_16, %c0_17] : memref<16x64xf32, #tpu.memory_space<vmem>>, vector<16x64xf32>
    tpu.vector_store %arg8[%c0_16, %c0_17], %28 {strides = array<i32>} : memref<16x64xf32, #tpu.memory_space<vmem>>, vector<16x64xf32>,
    %c0_i32_18 = arith.constant 0 : i32
    %30 = arith.cmpi eq, %arg1, %c0_i32_18 : i32
    %31 = arith.extui %30 : i1 to i32
    %c0_i32_19 = arith.constant 0 : i32
    %32 = arith.cmpi ne, %31, %c0_i32_19 : i32
    scf.if %32 {
      %c0_20 = arith.constant 0 : index
      %c0_21 = arith.constant 0 : index
      %33 = vector.load %arg8[%c0_20, %c0_21] : memref<16x64xf32, #tpu.memory_space<vmem>>, vector<16x64xf32>
      %cst_22 = arith.constant dense<0.000000e+00> : vector<16xf32>
      %34 = vector.multi_reduction <add>, %33, %cst_22 [1] : vector<16x64xf32> to vector<16xf32>
      %35 = vector.shape_cast %34 : vector<16xf32> to vector<16x1xf32>
      %36 = math.absf %35 : vector<16x1xf32>
      %cst_23 = arith.constant dense<0.000000e+00> : vector<1xf32>
      %37 = vector.multi_reduction <add>, %36, %cst_23 [0] : vector<16x1xf32> to vector<1xf32>
      %38 = vector.shape_cast %37 : vector<1xf32> to vector<1x1xf32>
      %cst_24 = arith.constant 9.99999996E-13 : f32
      %39 = vector.broadcast %cst_24 : f32 to vector<1x1xf32>
      %40 = arith.maximumf %38, %39 : vector<1x1xf32>
      %41 = vector.broadcast %40 : vector<1x1xf32> to vector<16x1xf32>
      %42 = arith.divf %35, %41 : vector<16x1xf32>
      %43 = vector.shape_cast %42 : vector<16x1xf32> to vector<1x16x1xf32>
      %c0_25 = arith.constant 0 : index
      %c0_26 = arith.constant 0 : index
      %c0_27 = arith.constant 0 : index
      %44 = vector.load %arg7[%c0_25, %c0_26, %c0_27] : memref<1x16x1xf32, #tpu.memory_space<vmem>>, vector<1x16x1xf32>
      tpu.vector_store %arg7[%c0_25, %c0_26, %c0_27], %43 {strides = array<i32>} : memref<1x16x1xf32, #tpu.memory_space<vmem>>, vector<1x16x1xf32>,
    } else {
    }
    return
  }
  func.func @transform_0(%arg0: i32, %arg1: i32) -> (i32, i32, i32) {
    %c0_i32 = arith.constant 0 : i32
    %c0_i32_0 = arith.constant 0 : i32
    return %arg0, %c0_i32, %arg1 : i32, i32, i32
  }
  func.func @transform_1(%arg0: i32, %arg1: i32) -> (i32, i32) {
    %c0_i32 = arith.constant 0 : i32
    %c0_i32_0 = arith.constant 0 : i32
    %c0_i32_1 = arith.constant 0 : i32
    return %c0_i32, %c0_i32_0 : i32, i32
  }
  func.func @transform_2(%arg0: i32, %arg1: i32) -> (i32, i32) {
    %c0_i32 = arith.constant 0 : i32
    %c0_i32_0 = arith.constant 0 : i32
    %c0_i32_1 = arith.constant 0 : i32
    return %c0_i32, %c0_i32_0 : i32, i32
  }
  func.func @transform_3(%arg0: i32, %arg1: i32) -> (i32, i32) {
    %c0_i32 = arith.constant 0 : i32
    %c0_i32_0 = arith.constant 0 : i32
    return %c0_i32, %arg1 : i32, i32
  }
  func.func @transform_4(%arg0: i32, %arg1: i32) -> (i32, i32, i32) {
    %c0_i32 = arith.constant 0 : i32
    %c0_i32_0 = arith.constant 0 : i32
    return %arg0, %c0_i32, %arg1 : i32, i32, i32
  }
  func.func @transform_5(%arg0: i32, %arg1: i32) -> (i32, i32, i32) {
    %c0_i32 = arith.constant 0 : i32
    %c0_i32_0 = arith.constant 0 : i32
    %c0_i32_1 = arith.constant 0 : i32
    return %arg0, %c0_i32, %c0_i32_0 : i32, i32, i32
  }
}

</mosaic_0001>

<bundles_post_ra>
// kernel: tpu_custom_call.1
= control target key start
LH: loop header
LB: loop body
LE: loop exit
PB: predicated region body
PF: predicated region fallthrough
CT: control target
= control target key end

     0   :  { %11 = vsyncpa [#allocation4], 0  ;;  %s1078_s0 = inlined_call_operand.hbm [shape: bf16[2,32,64], index: 0, kind: input, shape index: {}]   ;;  %s1079_s1 = inlined_call_operand.vmem [shape: bf16[16,32], index: 1, kind: input, shape index: {}]   ;;  %s1080_s2 = inlined_call_operand.vmem [shape: f32[16,1], index: 2, kind: input, shape index: {}]   ;;  %s1081_s3 = inlined_call_operand.vmem [shape: f32[1,64], index: 3, kind: input, shape index: {}]   ;;  %s1082_s4 = inlined_call_operand.hbm [shape: bf16[2,16,64], index: 4, kind: output, shape index: {0}]   ;;  %s1083_s5 = inlined_call_operand.vmem [shape: f32[2,16,1], index: 5, kind: output, shape index: {1}]  }
   0x1   :  { %13 = vsyncpa [#allocation4 + $0x1], 0 }
   0x2   :  { %14 = vsyncpa [#allocation5], 0 }
   0x3   :  { %16 = vsyncpa [#allocation5 + $0x1], 0  ;;  %s875_s18 = smov 0   ;;  %s877_s19 = smov 0  }
   0x4   :  { %s879_s20 = smov 0   ;;  %s881_s21 = smov 0  }
   0x5   :  { %s883_s22 = smov 0   ;;  %s885_s23 = smov 0  }
   0x6 LB: > { %s600_s24 = sadd.s32 4294967295, %s834_s23   ;;  %s601_s25 = sadd.s32 4294967294, %s834_s23   ;;  %s834_s23 = sphi %s885_s23, %s22_s23   ;;  %s830_s22 = sphi %s883_s22, %s1098_s22   ;;  %s826_s21 = sphi %s881_s21, %s1097_s21   ;;  %s822_s20 = sphi %s879_s20, %s1096_s20   ;;  %s818_s19 = sphi %s877_s19, %s1095_s19   ;;  %s814_s18 = sphi %s875_s18, %s1094_s18  }
   0x7   : > { %s34_s26 = sadd.s32 1, %s830_s22  ;;  %s43_s27 = sadd.s32 1, %s822_s20 }
   0x8   : > { %p36_p0 = scmp.ge.s32.totalorder %s34_s26, 2  ;;  %p50_p1 = scmp.ne.s32.totalorder %s822_s20, %s818_s19 }
   0x9   : > { %p51_p2 = scmp.eq.s32.totalorder %s834_s23, 0  ;;  %p56_p3 = scmp.ne.s32.totalorder %s818_s19, %s814_s18 }
   0xa   : > { %s1100_s26 = smov (%p36_p0, %s34_s26), 0  ;;  %p57_p5 = scmp.eq.s32.totalorder %s600_s24, 0 }
   0xb   : > { %p916_p4 = por %p51_p2, %p50_p1  ;;  %s38_s29 = ssub.s32 %s830_s22, %s1100_s26 }
   0xc   : > { %p150_p6 = scmp.eq.s32.totalorder %s600_s24, 1  ;;  %p41_p7 = scmp.eq.s32.totalorder %s38_s29, 0 }
   0xd   : > { %p922_p8 = por %p57_p5, %p56_p3  ;;  %p156_p10 = scmp.eq.s32.totalorder %s601_s25, 1 }
   0xe   : > { %p926_p9 = por %p150_p6, %p50_p1  ;;  %p653_p13 = scmp.lt.s32.totalorder %s834_s23, 2 }
   0xf   : > { %s931_s7 = scalar_select %p41_p7, %s822_s20, %s43_s27  }
  0x10   : > { %s1087_s6 = scalar_select %p926_p9, 1, 0 }
  0x11   : > { %p933_p11 = por %p156_p10, %p56_p3  ;;  %s214_s9 = sand.u32 1, %s822_s20  }
  0x12   : > { %s605_s10 = sshll.u32 %s214_s9, 4  ;;  %s625_s11 = sshll.u32 %s830_s22, 8 }
  0x13   : > { %s1088_s8 = scalar_select %p933_p11, 1, 0 }
  0x14   : > { %s944_s14 = scalar_lea.hbm %s1078_s0, %s625_s11  ;;  %s218_s15 = scalar_lea.vmem [#allocation3], %s605_s10 }
  0x15   : > { %s226_s16 = sshll.u32 %s218_s15, 4  ;;  %p950_p0 = pnand %p653_p13, %p916_p4  ;;  %s946_s16 = int_to_ptr.vmem [resolvable:$true] %s226_s16 }
  0x16   : > { %s955_s24 = scalar_lea.sflag [#allocation4], %s214_s9  ;;  %s722_s25 = scalar_lea.hbm %s944_s14, 256 }
  0x17   : > { %p723_p2 = scmp.ne.s32.totalorder %s944_s14, %s722_s25  ;;  %p724_p3 = pneg %p950_p0 }
  0x18   : > { %s727_s28 = scalar_lea.hbm %s1078_s0, 512  ;;  %p728_p4 = scmp.lt.u32.totalorder %s944_s14, %s1078_s0 }
  0x19   : > { %p725_p5 = pnand %p724_p3, %p723_p2  ;;  %p729_p7 = scmp.lt.u32.totalorder %s727_s28, %s722_s25 }
  0x1a   : > { %p731_p13 = scmp.lt.u32.totalorder %s722_s25, %s944_s14 }
  0x1b   : > { %p726_p6 = pneg %p725_p5  ;;  %p730_p10 = por %p729_p7, %p728_p4 }
  0x1d   : > { %p732_p12 = por %p731_p13, %p730_p10 }
  0x1f   : > { %p733_p1 = pnand %p732_p12, %p726_p6 }
  0x21   : > { %736 = shalt.err (!%p733_p1)
}
  0x22   : > { %s737_s9 = scalar_lea.vmem %s946_s16, 256  ;;  %s836_s12 = smov [#allocation3]  }
  0x23   : > { %p738_p2 = scmp.ne.s32.totalorder %s946_s16, %s737_s9  ;;  %s742_s13 = sshll.u32 %s836_s12, 4  ;;  %s743_s13 = int_to_ptr.vmem [resolvable:$false] %s742_s13 }
  0x24   : > { %s744_s15 = scalar_lea.vmem %s743_s13, 512  ;;  %p745_p9 = scmp.lt.s32.totalorder %s946_s16, %s743_s13 }
  0x25   : > { %p740_p5 = pnand %p738_p2, %p724_p3  ;;  %p746_p4 = scmp.lt.s32.totalorder %s744_s15, %s737_s9 }
  0x27   : > { %p741_p11 = pneg %p740_p5  ;;  %p747_p7 = por %p746_p4, %p745_p9 }
  0x29   : > { %p748_p10 = pnand %p747_p7, %p741_p11 }
  0x2b   : > { %751 = shalt.err (!%p748_p10)
}
  0x2c   : > { %s837_s25 = smov 64   ;;  %s838_s27 = smov 4  }
  0x2d   : > { %648 = dma.hbm_to_vmem [thread:$0]  (!%p950_p0), %s944_s14, 256, %s946_s16, %s955_s24, %s837_s25, %s837_s25, %s838_s27  }
  0x2e   : > { %p234_p12 = scmp.lt.s32.totalorder %s834_s23, 3  ;;  %p1090_p1 = scmp.ge.s32.totalorder %s834_s23, 1 }
  0x30   : > { %p235_p3 = pnand %p1090_p1, %p234_p12 }
  0x31   : > { %s987_s29 = sand.u32 (!%p235_p3), 1, %s818_s19  }
  0x32   : > { %238 = sbr.rel (%p235_p3) target bundleno = 533 (0x215), region = 36  ;;  %s609_s28 = sshll.u32 (!%p235_p3), %s987_s29, 4 }
  0x33   : > { %s241_s10 = scalar_lea.sflag (!%p235_p3), [#allocation4], %s987_s29  ;;  %s244_s11 = scalar_lea.vmem (!%p235_p3), [#allocation3], %s609_s28 }
  0x39   : > { %805 = dma.done.wait (%p922_p8), %s241_s10, 256  }
  0x3a   : > { %807 = vsyncadd (%p922_p8), %s241_s10, 4294967040  ;;  %vm368_vm0 = vcmask 523264   ;;  %v839_v0 = vmov 0.0   ;;  %vm840_vm1 = vmmov 0   ;;  %v841_v1 = vmov 0   ;;  %v711_v2 = vld [vmem:[%s244_s11] sm:$0xff]  }
  0x3b   : > { %633 = vmatprep.subr.bf16.mxu0 %v839_v0  ;;  %411 = vst.msk [vmem:[#allocation2] sm:$0xff] %vm368_vm0, %v839_v0  ;;  %412 = vst.msk [vmem:[#allocation2 + $0x8] sm:$0xff] %vm368_vm0, %v839_v0  ;;  %637 = vmatprep.mubr.msk.bf16.mxu0 %vm840_vm1, %v839_v0  ;;  %v712_v3 = vld [vmem:[%s244_s11 + $0x8] sm:$0xff]   ;;  %v294_v4 = vld [vmem:[%s1080_s2] sm:$0xff]  ;;  %vm323_vm2 = vcmask 261120   ;;  %s610_s12 = sshll.u32 %s987_s29, 3 }
  0x3c   : > { %710 = vset.pattern.permute.xlu0 %v841_v1  ;;  %634 = vmatpush3.bf16.msra.mxu0 %v711_v2  ;;  %v713_v5 = vld [vmem:[%s1079_s1] sm:$0xff]   ;;  %v295_v6 = vld [vmem:[%s1080_s2 + $0x8] sm:$0xff]  ;;  %vm404_vm3 = vcmask 519168   ;;  %s271_s25 = scalar_lea.vmem [#allocation6], %s610_s12  ;;  %s629_s27 = sshll.u32 %s826_s21, 7 }
  0x3d   : > { %635 = vmatprep.subr.bf16.mxu0 %v839_v0  ;;  %298 = vperm.xlu0 %710, %v294_v4   ;;  %v619_v40 = vld [vmem:[%s1081_s3] ss:$0 sm:$0xff]  ;;  %s475_s28 = sshll.u32 %s271_s25, 4  ;;  %s1022_s14 = scalar_lea.hbm %s1082_s4, %s629_s27  ;;  %s1024_s28 = int_to_ptr.vmem [resolvable:$true] %s475_s28 }
  0x3e   : > { %s456_s16 = scalar_lea.sflag [#allocation5], %s987_s29  ;;  %s752_s30 = scalar_lea.vmem %s1024_s28, 128 }
  0x3f   : > { %p753_p8 = scmp.ne.s32.totalorder %s1024_s28, %s752_s30  ;;  %p1091_p9 = scmp.ne.s32.totalorder %s1087_s6, 0 }
  0x40   : > { %636 = vmatpush3.bf16.msra.mxu0 %v712_v3  ;;  %s842_s17 = smov [#allocation6]  }
  0x41   : > { %303 = vperm.xlu0 %710, %v295_v6   ;;  %p754_p11 = pnand %p753_p8, %p1091_p9  ;;  %s756_s24 = sshll.u32 %s842_s17, 4  ;;  %s757_s24 = int_to_ptr.vmem [resolvable:$false] %s756_s24 }
  0x42   : > { %v413_v43 = vld [vmem:[#allocation2] sm:$0xff]  ;;  %v414_v44 = vld [vmem:[#allocation2 + $0x8] sm:$0xff]  ;;  %s758_s9 = scalar_lea.vmem %s757_s24, 256  ;;  %p759_p6 = scmp.lt.s32.totalorder %s1024_s28, %s757_s24 }
  0x43   : > { %638 = vmatmul.mubr.msk.bf16.vlgmr.msra.gmra.mrb[0].mxu0 %vm323_vm2, %v713_v5  ;;  %p755_p0 = pneg %p754_p11  ;;  %p760_p13 = scmp.lt.s32.totalorder %s758_s9, %s752_s30 }
  0x45   : > { %p761_p2 = por %p760_p13, %p759_p6 }
  0x47   : > { %p762_p5 = pnand %p761_p2, %p755_p0 }
  0xbc   : > { %v299_v7 = vpop.permute.xlu0 %298 }
  0xc0   : > { %v304_v11 = vpop.permute.xlu0 %303 }
 0x116   : > { %v361_v8 = vpop.f32.mrb[0].mxu0 }
 0x117   : > { %v362_v9 = vadd.f32 %v361_v8, %v299_v7  ;;  %v639_v10 = vpop.f32.mrb[1].mxu0 }
 0x118   : > { %v364_v12 = vpop.f32.mrb[2].mxu0 }
 0x119   : > { %v365_v13 = vadd.f32 %v364_v12, %v304_v11  ;;  %v640_v14 = vpop.f32.mrb[3].mxu0  ;;  %v369_v15 = vsel %vm368_vm0, %v362_v9, -inf }
 0x11b   : > { %v370_v16 = vsel %vm368_vm0, %v365_v13, -inf }
 0x11c   : > { %v371_v17 = vmax.f32 %v369_v15, %v370_v16 }
 0x11e   : > { %v372_v18 = vrot.slane %v371_v17, 4 }
 0x120   : > { %v373_v19 = vmax.f32 %v371_v17, %v372_v18 }
 0x122   : > { %v374_v20 = vrot.slane %v373_v19, 2 }
 0x124   : > { %v375_v21 = vmax.f32 %v373_v19, %v374_v20 }
 0x126   : > { %v376_v22 = vrot.slane %v375_v21, 1 }
 0x128   : > { %v377_v23 = vmax.f32 %v375_v21, %v376_v22 }
 0x12a   : > { %v378_v24 = vsub.f32 %v362_v9, %v377_v23  ;;  %v379_v25 = vsub.f32 %v365_v13, %v377_v23 }
 0x12c   : > { %v380_v26 = vmul.f32 1.442695, %v378_v24  ;;  %v382_v27 = vmul.f32 1.442695, %v379_v25 }
 0x12e   : > { %714 = vpow2.f32 %v380_v26 }
 0x12f   : > { %716 = vpow2.f32 %v382_v27 }
 0x138   : > { %v715_v28 = vpop.eup %714 }
 0x139   : > { %v717_v29 = vpop.eup %716  ;;  %v384_v30 = vsel %vm368_vm0, %v715_v28, 0.0 }
 0x13a   : > { %v385_v31 = vsel %vm368_vm0, %v717_v29, 0.0 }
 0x13b   : > { %v386_v32 = vadd.f32 %v385_v31, %v384_v30 }
 0x13d   : > { %v387_v33 = vrot.slane %v386_v32, 4 }
 0x13f   : > { %v388_v34 = vadd.f32 %v387_v33, %v386_v32 }
 0x141   : > { %v389_v35 = vrot.slane %v388_v34, 2 }
 0x143   : > { %v390_v36 = vadd.f32 %v389_v35, %v388_v34 }
 0x145   : > { %v391_v37 = vrot.slane %v390_v36, 1 }
 0x147   : > { %v392_v38 = vadd.f32 %v391_v37, %v390_v36 }
 0x149   : > { %718 = vrcp.f32 %v392_v38 }
 0x153   : > { %v719_v39 = vpop.eup %718 }
 0x154   : > { %v394_v41 = vmul.f32 %v719_v39, %v715_v28  ;;  %v395_v42 = vmul.f32 %v719_v39, %v717_v29 }
 0x156   : > { %v627_v45 = vpack.c.bf16 %v394_v41, %v394_v41  ;;  %v628_v46 = vpack.c.bf16 %v395_v42, %v395_v42  ;;  %v422_v47 = vmul.f32 %v619_v40, %v394_v41  ;;  %v423_v48 = vmul.f32 %v619_v40, %v395_v42 }
 0x158   : > { %v424_v49 = vadd.f32 %v422_v47, %v413_v43  ;;  %v425_v50 = vadd.f32 %v423_v48, %v414_v44  ;;  %405 = vst.msk [vmem:[%s271_s25] sm:$0xf] %vm404_vm3, %v627_v45  ;;  %406 = vst.msk [vmem:[%s271_s25 + $0x4] sm:$0xf] %vm404_vm3, %v628_v46 }
 0x15a   : > { %426 = vst.msk [vmem:[#allocation2] sm:$0xff] %vm368_vm0, %v424_v49  ;;  %427 = vst.msk [vmem:[#allocation2 + $0x8] sm:$0xff] %vm368_vm0, %v425_v50 }
 0x161   : > { %v431_v51 = vld [vmem:[#allocation2] sm:$0xff]  ;;  %v432_v53 = vld [vmem:[#allocation2 + $0x8] sm:$0xff] }
 0x162   : > { %v433_v52 = vsel %vm368_vm0, %v431_v51, 0.0  ;;  %v436_v54 = vsel %vm368_vm0, %v432_v53, 0.0 }
 0x163   : > { %434 = vadd.xlane.f32.xlu1 %v433_v52 }
 0x167   : > { %437 = vadd.xlane.f32.xlu1 %v436_v54 }
 0x168   : > { %765 = shalt.err (!%p762_p5)
}
 0x169   : > { %s766_s12 = scalar_lea.hbm %s1022_s14, 128  ;;  %s770_s25 = scalar_lea.hbm %s1082_s4, 256 }
 0x16a   : > { %p767_p4 = scmp.ne.s32.totalorder %s1022_s14, %s766_s12  ;;  %p771_p12 = scmp.lt.u32.totalorder %s1022_s14, %s1082_s4 }
 0x16b   : > { %p772_p1 = scmp.lt.u32.totalorder %s770_s25, %s766_s12  ;;  %p774_p8 = scmp.lt.u32.totalorder %s766_s12, %s1022_s14 }
 0x16c   : > { %p768_p7 = pnand %p767_p4, %p1091_p9 }
 0x16d   : > { %p773_p3 = por %p772_p1, %p771_p12 }
 0x16e   : > { %p769_p10 = pneg %p768_p7 }
 0x16f   : > { %p775_p11 = por %p774_p8, %p773_p3 }
 0x171   : > { %p776_p0 = pnand %p775_p11, %p769_p10 }
 0x173   : > { %779 = shalt.err (!%p776_p0)
}
 0x174   : > { %s843_s11 = smov 64   ;;  %s844_s30 = smov 4   ;;  %vm452_vm4 = vcmask 7168  }
 0x175   : > { %643 = dma.vmem_to_hbm [thread:$0]  (%p1091_p9), %s1024_s28, 128, %s1022_s14, %s456_s16, %s843_s11, %s843_s11, %s844_s30  }
 0x176   : > { %p282_p6 = scmp.lt.s32.totalorder %s826_s21, 1 }
 0x178   : > { %s1102_s21 = smov (!%p282_p6, %s826_s21), 1 }
 0x179   : > { %s626_s17 = sshll.u32 %s1102_s21, 4 }
 0x17a   : > { %s286_s28 = scalar_lea.vmem %s1083_s5, %s626_s17 }
 0x1f0   : > { %v435_v55 = vpop.xlane.xlu1 %434 }
 0x1f1   : > { %v439_v57 = vand.u32 2147483647, %v435_v55 }
 0x1f4   : > { %v438_v56 = vpop.xlane.xlu1 %437 }
 0x1f5   : > { %v440_v58 = vand.u32 2147483647, %v438_v56 }
 0x1f7   : > { %v441_v59 = vadd.f32 %v440_v58, %v439_v57 }
 0x1f9   : > { %v442_v60 = vrot.slane %v441_v59, 4 }
 0x1fb   : > { %v443_v61 = vadd.f32 %v442_v60, %v441_v59 }
 0x1fd   : > { %v444_v62 = vrot.slane %v443_v61, 2 }
 0x1ff   : > { %v445_v63 = vadd.f32 %v444_v62, %v443_v61 }
 0x201   : > { %v446_v0 = vrot.slane %v445_v63, 1 }
 0x203   : > { %v447_v1 = vadd.f32 %v446_v0, %v445_v63 }
 0x205   : > { %v448_v2 = vmax.f32 %v447_v1, 1e-12 }
 0x207   : > { %720 = vrcp.f32 %v448_v2 }
 0x211   : > { %v721_v3 = vpop.eup %720 }
 0x212   : > { %v450_v4 = vmul.f32 %v721_v3, %v435_v55  ;;  %v451_v5 = vmul.f32 %v721_v3, %v438_v56 }
 0x214   : > { %453 = vst.msk [vmem:[%s286_s28] sm:$0xff] %vm452_vm4, %v450_v4  ;;  %454 = vst.msk [vmem:[%s286_s28 + $0x8] sm:$0xff] %vm452_vm4, %v451_v5 }
 0x215 PF: > { %s493_s14 = sand.u32 1, %s814_s18   ;;  %p1092_p9 = scmp.ne.s32.totalorder %s1088_s8, 0 }
 0x216   : > { %p1093_p13 = scmp.ge.s32.totalorder %s834_s23, 2  ;;  %s494_s16 = scalar_lea.sflag [#allocation5], %s493_s14 }
 0x218   : > { %p650_p2 = pnand %p1093_p13, %p1092_p9 }
 0x21a   : > { %809 = dma.done.wait (!%p650_p2), %s494_s16, 128  }
 0x21b   : > { %811 = vsyncadd (!%p650_p2), %s494_s16, 4294967168  ;;  %s22_s23 = sadd.s32 1, %s834_s23   ;;  %s1094_s18 = smov %s818_s19 }
 0x21c   : > { %p19_p5 = scmp.ge.s32.totalorder %s22_s23, 4   ;;  %s1095_s19 = smov %s822_s20 }
 0x21d   : > { %s1096_s20 = smov %s931_s7  ;;  %s1097_s21 = smov %s830_s22 }
 0x21e   : > { %s1098_s22 = smov %s1100_s26  ;;  %21 = sbr.rel (!%p19_p5) target bundleno = 6 (0x6), region = 104 }
 0x225   :  { %507 = vsyncpa [#allocation4], 1 }
 0x226   :  { %509 = vsyncpa [#allocation4 + $0x1], 1 }
 0x227   :  { %510 = vsyncpa [#allocation5], 1 }
 0x228   :  { %512 = vsyncpa [#allocation5 + $0x1], 1 }

</bundles_post_ra>
